<compile_context>
chip_gen: v7x
topology: tpu7x:2x2x1
jax: 0.10.0
libtpu: 0.0.40
codegen_flags: <defaults>
</compile_context>

<pallas_src>
import jax
import jax.numpy as jnp
from jax import lax
from jax.experimental import pallas as pl
from jax.experimental.pallas import tpu as pltpu


# ---------------------------------------------------------------------------
# Kernels
# ---------------------------------------------------------------------------
def _mlp_attn_store(sl_flat, w1_ref, b1_ref, w2_ref, b2_ref, out_ref):
    """Shared tail: MLP -> intra attention -> slice stores.

    sl_flat: (Bt*L, Hp) float32 sent_linear rows for this block.
    """
    bt, L, two_hp = out_ref.shape
    Hp = two_hp // 2
    cd = w1_ref.dtype                         # MXU operand dtype (f32 or bf16)

    # f_intra MLP: (Linear + ReLU) x 2, dropout = identity (eval mode).
    # MXU operands in cd, accumulation/bias/ReLU in f32.
    x = sl_flat.astype(cd)
    h1 = jnp.dot(x, w1_ref[...], preferred_element_type=jnp.float32) + b1_ref[...]
    h1 = jnp.maximum(h1, 0.0)
    f = jnp.dot(h1.astype(cd), w2_ref[...],
                preferred_element_type=jnp.float32) + b2_ref[...]
    f = jnp.maximum(f, 0.0)
    f = f.reshape(bt, L, Hp).astype(cd)

    # score = f @ f^T (batched); contract the last dims of both operands so
    # the MXU consumes f untransposed (no materialized f.T copy).
    score = lax.dot_general(
        f, f, (((2,), (2,)), ((0,), (0,))),
        preferred_element_type=jnp.float32)                    # (bt, L, L)

    # Softmax over the last dim (max-subtracted); reciprocal on the EUP slot.
    m = jnp.max(score, axis=-1, keepdims=True)
    p = jnp.exp(score - m)
    prob = p * pl.reciprocal(jnp.sum(p, axis=-1, keepdims=True), approx=True)

    # sent_attn = prob @ sent_linear (batched).
    sl3 = sl_flat.reshape(bt, L, Hp)
    attn = lax.dot_general(
        prob.astype(cd), sl3.astype(cd),
        (((2,), (1,)), ((0,), (0,))),
        preferred_element_type=jnp.float32)                    # (bt, L, Hp)

    # Two lane-aligned slice stores (Hp is a multiple of 128).
    out_ref[:, :, :Hp] = sl3.astype(out_ref.dtype)
    out_ref[:, :, Hp:] = attn.astype(out_ref.dtype)


def _encoder_gather_kernel(ids_ref, tab_ref, w1_ref, b1_ref, w2_ref, b2_ref,
                           out_ref):
    """In-kernel embedding gather from a VMEM-resident folded table.

    ids_ref: (Bt, L, 1) int32 token ids.
    tab_ref: (V, Hp) folded table (= embedding @ W_in), resident in VMEM.
    """
    bt, L, two_hp = out_ref.shape
    V = tab_ref.shape[0]
    cd = tab_ref.dtype

    # Collapse leading dims only (layout-friendly reshape): (Bt, L, 1)->(Bt*L, 1)
    ids = ids_ref[...].reshape(bt * L, 1)
    # Exact gather as a one-hot MXU matmul (one 1.0 per row, rest zeros).
    eq = ids == lax.broadcasted_iota(jnp.int32, (bt * L, V), 1)
    onehot = jnp.where(eq, 1.0, 0.0).astype(cd)                 # (Bt*L, V)
    sl_flat = jnp.dot(onehot, tab_ref[...],
                      preferred_element_type=jnp.float32)       # (Bt*L, Hp) f32

    _mlp_attn_store(sl_flat, w1_ref, b1_ref, w2_ref, b2_ref, out_ref)


def _encoder_sl_kernel(sl_ref, w1_ref, b1_ref, w2_ref, b2_ref, out_ref):
    """Fallback: sent_linear gathered in the wrapper and streamed per block."""
    bt, L, Hp = sl_ref.shape
    sl_flat = sl_ref[...].reshape(bt * L, Hp).astype(jnp.float32)
    _mlp_attn_store(sl_flat, w1_ref, b1_ref, w2_ref, b2_ref, out_ref)


# ---------------------------------------------------------------------------
# Wrapper / tiling policy
# ---------------------------------------------------------------------------
def _round_up(x, m):
    return ((x + m - 1) // m) * m


def _vmem_capacity_bytes():
    try:
        return int(pltpu.get_tpu_info().vmem_capacity_bytes)
    except Exception:
        return 64 << 20      # conservative: v7x per-TensorCore capacity


def _choose_block_batch(B, L, Hp, V, cd_bytes, out_bytes, budget,
                        in_kernel_gather):
    """Largest divisor of B whose per-step VMEM footprint fits `budget`,
    keeping >= 2 grid steps when B permits (so v7x megacore can shard)."""
    const_bytes = 2 * (2 * Hp * Hp * cd_bytes + 2 * Hp * 4)   # w1,w2,b1,b2 (x2 bufs)
    if in_kernel_gather:
        const_bytes += 2 * V * Hp * cd_bytes                  # resident folded table

    def footprint(bt):
        fp = const_bytes
        if in_kernel_gather:
            fp += 2 * bt * L * 4                              # token-id block (x2)
            fp += bt * L * V * cd_bytes                       # one-hot intermediate
        else:
            fp += 2 * bt * L * Hp * cd_bytes                  # sent_linear block (x2)
        fp += 2 * bt * L * 2 * Hp * out_bytes                 # output block (x2)
        fp += bt * (3 * L * L + 8 * L * Hp) * 4               # live f32 intermediates
        return fp

    divisors = [d for d in range(1, B + 1) if B % d == 0]
    feasible = [d for d in divisors if footprint(d) <= budget] or [1]
    multi = [d for d in feasible if B // d >= 2]
    return max(multi) if multi else max(feasible)


def prepare_encoder_params(params, *, intra_attn=True, use_bf16=True):
    """One-time weight preparation (call when weights are set, not per forward).

    Folds input_linear into the embedding table and zero-pads H to a multiple
    of 128 so all kernel tiles / stores are lane-dense.
    """
    emb = params["embedding"].astype(jnp.float32)
    w_in = params["w_in"].astype(jnp.float32)
    V = emb.shape[0]
    H = w_in.shape[1]
    # Exact algebraic fold: input_linear has no bias and no preceding
    # nonlinearity, so gather(emb) @ W_in == gather(emb @ W_in).
    folded = jnp.dot(emb, w_in, preferred_element_type=jnp.float32)   # (V, H)

    prepared = {"H": H, "V": V, "intra_attn": bool(intra_attn),
                "use_bf16": bool(use_bf16)}
    if not intra_attn:
        prepared["folded_f32"] = folded
        return prepared

    cd = jnp.bfloat16 if use_bf16 else jnp.float32
    Hp = _round_up(H, 128)
    pad = Hp - H

    def pad_cols(a):
        return jnp.pad(a, ((0, 0), (0, pad))) if pad else a

    def pad_both(a):
        return jnp.pad(a, ((0, pad), (0, pad))) if pad else a

    def pad_vec(a):
        return jnp.pad(a, (0, pad)) if pad else a

    prepared.update({
        "Hp": Hp,
        "cd": cd,
        "folded_cd": pad_cols(folded).astype(cd),                         # (V, Hp)
        "w1": pad_both(params["w1"].astype(jnp.float32)).astype(cd),      # (Hp, Hp)
        "w2": pad_both(params["w2"].astype(jnp.float32)).astype(cd),      # (Hp, Hp)
        "b1": pad_vec(params["b1"].astype(jnp.float32)).reshape(1, Hp),   # f32
        "b2": pad_vec(params["b2"].astype(jnp.float32)).reshape(1, Hp),   # f32
    })
    return prepared


def encoder_apply(prepared, sent, *, gather_in_kernel=None):
    """Apply the encoder forward. sent: (B, L) int token ids."""
    B, L = sent.shape
    H = prepared["H"]

    if not prepared["intra_attn"]:
        # With input_linear folded, this path is a pure gather (no kernel).
        return jnp.take(prepared["folded_f32"], sent, axis=0)

    Hp = prepared["Hp"]
    V = prepared["V"]
    cd = prepared["cd"]
    cd_bytes = jnp.dtype(cd).itemsize
    out_dtype = jnp.float32
    out_bytes = jnp.dtype(out_dtype).itemsize

    cap = _vmem_capacity_bytes()
    budget = (cap * 3) // 4          # ~96 MiB on v5e/v6e, ~48 MiB on v7x

    # Keep the folded table resident in VMEM (in-kernel gather) when it is
    # small enough; otherwise gather sent_linear in the wrapper.
    table_bytes = 2 * V * Hp * cd_bytes
    if gather_in_kernel is None:
        gather_in_kernel = (table_bytes <= budget // 4) and (V <= 8192)

    Bt = _choose_block_batch(B, L, Hp, V, cd_bytes, out_bytes, budget,
                             gather_in_kernel)
    grid = (B // Bt,)

    weight_specs = [
        pl.BlockSpec((Hp, Hp), lambda b: (0, 0)),
        pl.BlockSpec((1, Hp), lambda b: (0, 0)),
        pl.BlockSpec((Hp, Hp), lambda b: (0, 0)),
        pl.BlockSpec((1, Hp), lambda b: (0, 0)),
    ]
    out_spec = pl.BlockSpec((Bt, L, 2 * Hp), lambda b: (b, 0, 0))
    cparams = pltpu.CompilerParams(
        dimension_semantics=("parallel",),
        vmem_limit_bytes=int(budget),
    )
    w1, b1, w2, b2 = prepared["w1"], prepared["b1"], prepared["w2"], prepared["b2"]

    if gather_in_kernel:
        ids3 = sent.astype(jnp.int32).reshape(B, L, 1)
        in_specs = [
            pl.BlockSpec((Bt, L, 1), lambda b: (b, 0, 0)),   # token ids
            pl.BlockSpec((V, Hp), lambda b: (0, 0)),         # resident table
        ] + weight_specs
        y = pl.pallas_call(
            _encoder_gather_kernel,
            out_shape=jax.ShapeDtypeStruct((B, L, 2 * Hp), out_dtype),
            grid_spec=pltpu.PrefetchScalarGridSpec(
                num_scalar_prefetch=0, grid=grid,
                in_specs=in_specs, out_specs=out_spec),
            compiler_params=cparams,
        )(ids3, prepared["folded_cd"], w1, b1, w2, b2)
    else:
        # Wrapper-side gather fallback (large vocab): one HBM round trip of
        # sent_linear, streamed per block in the MXU operand dtype.
        sl = jnp.take(prepared["folded_cd"], sent, axis=0)    # (B, L, Hp) cd
        in_specs = [pl.BlockSpec((Bt, L, Hp), lambda b: (b, 0, 0))] + weight_specs
        y = pl.pallas_call(
            _encoder_sl_kernel,
            out_shape=jax.ShapeDtypeStruct((B, L, 2 * Hp), out_dtype),
            grid_spec=pltpu.PrefetchScalarGridSpec(
                num_scalar_prefetch=0, grid=grid,
                in_specs=in_specs, out_specs=out_spec),
            compiler_params=cparams,
        )(sl, w1, b1, w2, b2)

    if Hp == H:
        return y
    # Strip the lane padding: [sl_pad | attn_pad] -> [sl | attn] = (B, L, 2H).
    return jnp.concatenate([y[..., :H], y[..., Hp:Hp + H]], axis=-1)


def encoder_forward(sent, params, *, intra_attn=True, use_bf16=True,
                    gather_in_kernel=None):
    """Convenience: prepare + apply.  Prefer prepare_encoder_params() once and
    encoder_apply() per step so the weight fold is not redone every forward."""
    prepared = prepare_encoder_params(params, intra_attn=intra_attn,
                                      use_bf16=use_bf16)
    return encoder_apply(prepared, sent, gather_in_kernel=gather_in_kernel)


# ---------------------------------------------------------------------------
# Parameter init + pure-JAX reference (matches the PyTorch module, eval mode)
# ---------------------------------------------------------------------------
def init_params(key, num_embeddings, embedding_size, hidden_size, para_init):
    ks = jax.random.split(key, 6)
    return {
        "embedding": jax.random.normal(
            ks[0], (num_embeddings, embedding_size), jnp.float32),
        "w_in": para_init * jax.random.normal(
            ks[1], (embedding_size, hidden_size), jnp.float32),
        "w1": para_init * jax.random.normal(
            ks[2], (hidden_size, hidden_size), jnp.float32),
        "b1": para_init * jax.random.normal(
            ks[3], (hidden_size,), jnp.float32),
        "w2": para_init * jax.random.normal(
            ks[4], (hidden_size, hidden_size), jnp.float32),
        "b2": para_init * jax.random.normal(
            ks[5], (hidden_size,), jnp.float32),
    }


def _reference_forward(sent, params, *, intra_attn=True):
    emb = jnp.take(params["embedding"], sent, axis=0)
    sl = emb @ params["w_in"]
    if not intra_attn:
        return sl
    h1 = jnp.maximum(sl @ params["w1"] + params["b1"], 0.0)
    f = jnp.maximum(h1 @ params["w2"] + params["b2"], 0.0)
    score = jnp.einsum("blh,bkh->blk", f, f)
    prob = jax.nn.softmax(score, axis=-1)
    attn = jnp.einsum("blk,bkh->blh", prob, sl)
    return jnp.concatenate([sl, attn], axis=-1)


# ---------------------------------------------------------------------------
if __name__ == "__main__":
    num_embeddings = 50
    embedding_size = 32
    hidden_size = 32
    para_init = 0.01
    B, L = 2, 8

    key = jax.random.PRNGKey(0)
    pkey, skey = jax.random.split(key)
    params = init_params(pkey, num_embeddings, embedding_size, hidden_size,
                         para_init)
    sent = jax.random.randint(skey, (B, L), 0, num_embeddings, dtype=jnp.int32)

    ref = _reference_forward(sent, params, intra_attn=True)

    # f32 MXU-operand path, in-kernel gather (resident folded table).
    prep32 = prepare_encoder_params(params, intra_attn=True, use_bf16=False)
    out = jax.block_until_ready(
        jax.jit(lambda s: encoder_apply(prep32, s))(sent))
    assert out.shape == (B, L, 2 * hidden_size)
    assert jnp.allclose(out, ref, atol=1e-3, rtol=1e-3), \
        float(jnp.max(jnp.abs(out - ref)))

    # bf16 MXU-operand path (valid on v5e/v6e/v7x; f32 accumulation).
    out16 = jax.block_until_ready(
        encoder_forward(sent, params, intra_attn=True, use_bf16=True))
    assert jnp.allclose(out16, ref, atol=1e-2, rtol=1e-2), \
        float(jnp.max(jnp.abs(out16 - ref)))

    # Forced wrapper-gather fallback path (large-vocab code path).
    out_fb = jax.block_until_ready(
        encoder_apply(prep32, sent, gather_in_kernel=False))
    assert jnp.allclose(out_fb, ref, atol=1e-3, rtol=1e-3), \
        float(jnp.max(jnp.abs(out_fb - ref)))

    # intra_attn=False path (reduces to the folded-table gather).
    prep_na = prepare_encoder_params(params, intra_attn=False)
    out_na = jax.block_until_ready(encoder_apply(prep_na, sent))
    ref_na = _reference_forward(sent, params, intra_attn=False)
    assert jnp.allclose(out_na, ref_na, atol=1e-5, rtol=1e-5)

    print("KERNEL_OK")
</pallas_src>

<mosaic_0001>
module attributes {stable_mosaic.version = 11 : i64} {
  func.func @_encoder_gather_kernel(%arg0: i32, %arg1: memref<1x8x1xi32, #tpu.memory_space<vmem>>, %arg2: memref<50x128xf32, #tpu.memory_space<vmem>>, %arg3: memref<128x128xf32, #tpu.memory_space<vmem>>, %arg4: memref<1x128xf32, #tpu.memory_space<vmem>>, %arg5: memref<128x128xf32, #tpu.memory_space<vmem>>, %arg6: memref<1x128xf32, #tpu.memory_space<vmem>>, %arg7: memref<1x8x256xf32, #tpu.memory_space<vmem>>) attributes {dimension_semantics = [#tpu.dimension_semantics<parallel>], iteration_bounds = array<i64: 2>, scalar_prefetch = 0 : i64, scratch_operands = 0 : i64, tpu.core_type = #tpu.core_type<tc>, window_params = [{transform_indices = @transform_0, window_bounds = array<i64: 1, 8, 1>}, {pipeline_mode = #tpu.pipeline_mode<synchronous>, transform_indices = @transform_1, window_bounds = array<i64: 50, 128>}, {pipeline_mode = #tpu.pipeline_mode<synchronous>, transform_indices = @transform_2, window_bounds = array<i64: 128, 128>}, {pipeline_mode = #tpu.pipeline_mode<synchronous>, transform_indices = @transform_3, window_bounds = array<i64: 1, 128>}, {pipeline_mode = #tpu.pipeline_mode<synchronous>, transform_indices = @transform_4, window_bounds = array<i64: 128, 128>}, {pipeline_mode = #tpu.pipeline_mode<synchronous>, transform_indices = @transform_5, window_bounds = array<i64: 1, 128>}, {transform_indices = @transform_6, window_bounds = array<i64: 1, 8, 256>}]} {
    %c0 = arith.constant 0 : index
    %c0_0 = arith.constant 0 : index
    %c0_1 = arith.constant 0 : index
    %0 = vector.load %arg1[%c0, %c0_0, %c0_1] : memref<1x8x1xi32, #tpu.memory_space<vmem>>, vector<1x8x1xi32>
    %1 = vector.shape_cast %0 : vector<1x8x1xi32> to vector<8x1xi32>
    %2 = tpu.iota {dimensions = array<i32: 1>} : vector<8x50xi32>
    %3 = vector.broadcast %1 : vector<8x1xi32> to vector<8x50xi32>
    %4 = arith.cmpi eq, %3, %2 : vector<8x50xi32>
    %cst = arith.constant 1.000000e+00 : f32
    %cst_2 = arith.constant 0.000000e+00 : f32
    %5 = vector.broadcast %cst : f32 to vector<8x50xf32>
    %6 = vector.broadcast %cst_2 : f32 to vector<8x50xf32>
    %7 = arith.select %4, %5, %6 : vector<8x50xi1>, vector<8x50xf32>
    %c0_3 = arith.constant 0 : index
    %c0_4 = arith.constant 0 : index
    %8 = vector.load %arg2[%c0_3, %c0_4] : memref<50x128xf32, #tpu.memory_space<vmem>>, vector<50x128xf32>
    %cst_5 = arith.constant dense<0.000000e+00> : vector<8x128xf32>
    %9 = tpu.matmul %7, %8, %cst_5 {dimension_numbers = #tpu.dot_dimension_numbers<[1], [0], [0], [1], [0, 0, 1, 1], [], []>} : vector<8x50xf32>, vector<50x128xf32>, vector<8x128xf32> -> vector<8x128xf32>
    %c0_6 = arith.constant 0 : index
    %c0_7 = arith.constant 0 : index
    %10 = vector.load %arg3[%c0_6, %c0_7] : memref<128x128xf32, #tpu.memory_space<vmem>>, vector<128x128xf32>
    %cst_8 = arith.constant dense<0.000000e+00> : vector<8x128xf32>
    %11 = tpu.matmul %9, %10, %cst_8 {dimension_numbers = #tpu.dot_dimension_numbers<[1], [0], [0], [1], [0, 0, 1, 1], [], []>} : vector<8x128xf32>, vector<128x128xf32>, vector<8x128xf32> -> vector<8x128xf32>
    %c0_9 = arith.constant 0 : index
    %c0_10 = arith.constant 0 : index
    %12 = vector.load %arg4[%c0_9, %c0_10] : memref<1x128xf32, #tpu.memory_space<vmem>>, vector<1x128xf32>
    %13 = vector.broadcast %12 : vector<1x128xf32> to vector<8x128xf32>
    %14 = arith.addf %11, %13 : vector<8x128xf32>
    %cst_11 = arith.constant 0.000000e+00 : f32
    %15 = vector.broadcast %cst_11 : f32 to vector<8x128xf32>
    %16 = arith.maximumf %14, %15 : vector<8x128xf32>
    %c0_12 = arith.constant 0 : index
    %c0_13 = arith.constant 0 : index
    %17 = vector.load %arg5[%c0_12, %c0_13] : memref<128x128xf32, #tpu.memory_space<vmem>>, vector<128x128xf32>
    %cst_14 = arith.constant dense<0.000000e+00> : vector<8x128xf32>
    %18 = tpu.matmul %16, %17, %cst_14 {dimension_numbers = #tpu.dot_dimension_numbers<[1], [0], [0], [1], [0, 0, 1, 1], [], []>} : vector<8x128xf32>, vector<128x128xf32>, vector<8x128xf32> -> vector<8x128xf32>
    %c0_15 = arith.constant 0 : index
    %c0_16 = arith.constant 0 : index
    %19 = vector.load %arg6[%c0_15, %c0_16] : memref<1x128xf32, #tpu.memory_space<vmem>>, vector<1x128xf32>
    %20 = vector.broadcast %19 : vector<1x128xf32> to vector<8x128xf32>
    %21 = arith.addf %18, %20 : vector<8x128xf32>
    %cst_17 = arith.constant 0.000000e+00 : f32
    %22 = vector.broadcast %cst_17 : f32 to vector<8x128xf32>
    %23 = arith.maximumf %21, %22 : vector<8x128xf32>
    %24 = vector.shape_cast %23 : vector<8x128xf32> to vector<1x8x128xf32>
    %cst_18 = arith.constant dense<0.000000e+00> : vector<1x8x8xf32>
    %25 = tpu.matmul %24, %24, %cst_18 {dimension_numbers = #tpu.dot_dimension_numbers<[2], [2], [1], [1], [0, 0, 0, 1, 1, 1], [0], [0]>} : vector<1x8x128xf32>, vector<1x8x128xf32>, vector<1x8x8xf32> -> vector<1x8x8xf32>
    %cst_19 = arith.constant dense<0xFF800000> : vector<1x8xf32>
    %26 = vector.multi_reduction <maximumf>, %25, %cst_19 [2] : vector<1x8x8xf32> to vector<1x8xf32>
    %27 = vector.shape_cast %26 : vector<1x8xf32> to vector<1x8x1xf32>
    %28 = vector.broadcast %27 : vector<1x8x1xf32> to vector<1x8x8xf32>
    %29 = arith.subf %25, %28 : vector<1x8x8xf32>
    %30 = math.exp %29 : vector<1x8x8xf32>
    %cst_20 = arith.constant dense<0.000000e+00> : vector<1x8xf32>
    %31 = vector.multi_reduction <add>, %30, %cst_20 [2] : vector<1x8x8xf32> to vector<1x8xf32>
    %32 = vector.shape_cast %31 : vector<1x8xf32> to vector<1x8x1xf32>
    %33 = tpu.reciprocal %32 {approx = true} : vector<1x8x1xf32> -> vector<1x8x1xf32>
    %34 = vector.broadcast %33 : vector<1x8x1xf32> to vector<1x8x8xf32>
    %35 = arith.mulf %30, %34 : vector<1x8x8xf32>
    %36 = vector.shape_cast %9 : vector<8x128xf32> to vector<1x8x128xf32>
    %cst_21 = arith.constant dense<0.000000e+00> : vector<1x8x128xf32>
    %37 = tpu.matmul %35, %36, %cst_21 {dimension_numbers = #tpu.dot_dimension_numbers<[2], [1], [1], [2], [0, 0, 0, 1, 1, 2], [0], [0]>} : vector<1x8x8xf32>, vector<1x8x128xf32>, vector<1x8x128xf32> -> vector<1x8x128xf32>
    %c0_22 = arith.constant 0 : index
    %c0_23 = arith.constant 0 : index
    %c0_24 = arith.constant 0 : index
    %38 = vector.load %arg7[%c0_22, %c0_23, %c0_24] : memref<1x8x256xf32, #tpu.memory_space<vmem>>, vector<1x8x128xf32>
    tpu.vector_store %arg7[%c0_22, %c0_23, %c0_24], %36 {strides = array<i32>} : memref<1x8x256xf32, #tpu.memory_space<vmem>>, vector<1x8x128xf32>,
    %c0_25 = arith.constant 0 : index
    %c0_26 = arith.constant 0 : index
    %c128 = arith.constant 128 : index
    %39 = vector.load %arg7[%c0_25, %c0_26, %c128] : memref<1x8x256xf32, #tpu.memory_space<vmem>>, vector<1x8x128xf32>
    tpu.vector_store %arg7[%c0_25, %c0_26, %c128], %37 {strides = array<i32>} : memref<1x8x256xf32, #tpu.memory_space<vmem>>, vector<1x8x128xf32>,
    return
  }
  func.func @transform_0(%arg0: i32) -> (i32, i32, i32) {
    %c0_i32 = arith.constant 0 : i32
    %c0_i32_0 = arith.constant 0 : i32
    %c0_i32_1 = arith.constant 0 : i32
    return %arg0, %c0_i32, %c0_i32_0 : i32, i32, i32
  }
  func.func @transform_1(%arg0: i32) -> (i32, i32) {
    %c0_i32 = arith.constant 0 : i32
    %c0_i32_0 = arith.constant 0 : i32
    %c0_i32_1 = arith.constant 0 : i32
    return %c0_i32, %c0_i32_0 : i32, i32
  }
  func.func @transform_2(%arg0: i32) -> (i32, i32) {
    %c0_i32 = arith.constant 0 : i32
    %c0_i32_0 = arith.constant 0 : i32
    %c0_i32_1 = arith.constant 0 : i32
    return %c0_i32, %c0_i32_0 : i32, i32
  }
  func.func @transform_3(%arg0: i32) -> (i32, i32) {
    %c0_i32 = arith.constant 0 : i32
    %c0_i32_0 = arith.constant 0 : i32
    %c0_i32_1 = arith.constant 0 : i32
    return %c0_i32, %c0_i32_0 : i32, i32
  }
  func.func @transform_4(%arg0: i32) -> (i32, i32) {
    %c0_i32 = arith.constant 0 : i32
    %c0_i32_0 = arith.constant 0 : i32
    %c0_i32_1 = arith.constant 0 : i32
    return %c0_i32, %c0_i32_0 : i32, i32
  }
  func.func @transform_5(%arg0: i32) -> (i32, i32) {
    %c0_i32 = arith.constant 0 : i32
    %c0_i32_0 = arith.constant 0 : i32
    %c0_i32_1 = arith.constant 0 : i32
    return %c0_i32, %c0_i32_0 : i32, i32
  }
  func.func @transform_6(%arg0: i32) -> (i32, i32, i32) {
    %c0_i32 = arith.constant 0 : i32
    %c0_i32_0 = arith.constant 0 : i32
    %c0_i32_1 = arith.constant 0 : i32
    return %arg0, %c0_i32, %c0_i32_0 : i32, i32, i32
  }
}

</mosaic_0001>

<bundles_post_ra>
// kernel: _lambda_.1
= control target key start
LH: loop header
LB: loop body
LE: loop exit
PB: predicated region body
PF: predicated region fallthrough
CT: control target
= control target key end

     0   :  { %11 = vsyncpa [#allocation3], 0  ;;  %s1410_s0 = inlined_call_operand.vmem [shape: s32[2,8,1], index: 0, kind: input, shape index: {}]   ;;  %s1411_s1 = inlined_call_operand.hbm [shape: f32[50,128], index: 1, kind: input, shape index: {}]   ;;  %s1412_s2 = inlined_call_operand.hbm [shape: f32[128,128], index: 2, kind: input, shape index: {}]   ;;  %s1413_s3 = inlined_call_operand.vmem [shape: f32[1,128], index: 3, kind: input, shape index: {}]   ;;  %s1414_s4 = inlined_call_operand.hbm [shape: f32[128,128], index: 4, kind: input, shape index: {}]   ;;  %s1415_s5 = inlined_call_operand.vmem [shape: f32[1,128], index: 5, kind: input, shape index: {}]   ;;  %s1416_s6 = inlined_call_operand.vmem [shape: f32[2,8,256], index: 6, kind: output, shape index: {}]  }
   0x1   :  { %12 = vsyncpa [#allocation5], 0  ;;  %s1233_s21 = smov 0  }
   0x2 LB: > { %s1239_s22 = sadd.s32 4294967295, %s1187_s21   ;;  %p819_p0 = scmp.ge.s32.totalorder %s1187_s21, 1  ;;  %s1187_s21 = sphi %s1233_s21, %s18_s21  }
   0x3   : > { %p180_p1 = scmp.lt.s32.totalorder %s1187_s21, 3  ;;  %p1417_p2 = scmp.eq.s32.totalorder %s1239_s22, 0 }
   0x4   : > { %s1189_s24 = smov [#allocation4]   ;;  %s1190_s26 = smov [#allocation2]  }
   0x5   : > { %p1244_p3 = pnand %p819_p0, %p180_p1  ;;  %s205_s25 = sshll.u32 %s1189_s24, 4  ;;  %s206_s25 = int_to_ptr.vmem [resolvable:$true] %s205_s25 }
   0x6   : > { %s192_s27 = sshll.u32 %s1190_s26, 4  ;;  %s1191_s29 = smov [#allocation6]   ;;  %s1256_s27 = int_to_ptr.vmem [resolvable:$true] %s192_s27 }
   0x7   : > { %s1419_s23 = scalar_select %p1244_p3, 1, 0 }
   0x8   : > { %p1051_p4 = pneg %p1244_p3  ;;  %s221_s30 = sshll.u32 %s1191_s29, 4  ;;  %s1258_s30 = int_to_ptr.vmem [resolvable:$true] %s221_s30 }
   0x9   : > { %s1089_s9 = scalar_lea.hbm %s1412_s2, 2048 }
   0xa   : > { %p1252_p5 = pnand %p1417_p2, %p1051_p4  ;;  %p1090_p6 = scmp.ne.s32.totalorder %s1412_s2, %s1089_s9 }
   0xb   : > { %p1096_p10 = scmp.lt.u32.totalorder %s1089_s9, %s1412_s2 }
   0xc   : > { %p1268_p7 = pneg %p1252_p5 }
   0xe   : > { %p1092_p8 = pnand %p1268_p7, %p1090_p6 }
  0x10   : > { %p1093_p9 = pneg %p1092_p8 }
  0x12   : > { %p1098_p11 = pnand %p1096_p10, %p1093_p9 }
  0x14   : > { %1101 = shalt.err (!%p1098_p11)
}
  0x15   : > { %s1102_s15 = scalar_lea.vmem %s206_s25, 2048  ;;  %p1110_p1 = scmp.lt.s32.totalorder %s206_s25, %s206_s25 }
  0x16   : > { %p1103_p12 = scmp.ne.s32.totalorder %s206_s25, %s1102_s15  ;;  %p1111_p4 = scmp.lt.s32.totalorder %s1102_s15, %s1102_s15 }
  0x18   : > { %p1105_p13 = pnand %p1103_p12, %p1268_p7  ;;  %p1112_p2 = por %p1111_p4, %p1110_p1 }
  0x1a   : > { %p1106_p0 = pneg %p1105_p13 }
  0x1c   : > { %p1113_p3 = pnand %p1112_p2, %p1106_p0 }
  0x1e   : > { %1116 = shalt.err (!%p1113_p3)
}
  0x1f   : > { %s1192_s16 = smov 128   ;;  %s1193_s17 = smov 8  }
  0x20   : > { %1057 = dma.hbm_to_vmem [thread:$0]  (!%p1252_p5), %s1412_s2, 2048, %s206_s25, [#allocation5], %s1192_s16, %s1192_s16, %s1193_s17  }
  0x21   : > { %s1117_s26 = scalar_lea.hbm %s1411_s1, 896 }
  0x22   : > { %p1118_p2 = scmp.ne.s32.totalorder %s1411_s1, %s1117_s26  ;;  %p1124_p8 = scmp.lt.u32.totalorder %s1117_s26, %s1411_s1 }
  0x24   : > { %p1120_p3 = pnand %p1118_p2, %p1268_p7 }
  0x26   : > { %p1121_p6 = pneg %p1120_p3 }
  0x28   : > { %p1126_p9 = pnand %p1124_p8, %p1121_p6 }
  0x2a   : > { %1129 = shalt.err (!%p1126_p9)
}
  0x2b   : > { %s1130_s25 = scalar_lea.vmem %s1256_s27, 896  ;;  %p1138_p13 = scmp.lt.s32.totalorder %s1256_s27, %s1256_s27 }
  0x2c   : > { %p1131_p10 = scmp.ne.s32.totalorder %s1256_s27, %s1130_s25  ;;  %p1139_p0 = scmp.lt.s32.totalorder %s1130_s25, %s1130_s25 }
  0x2e   : > { %p1133_p11 = pnand %p1131_p10, %p1268_p7  ;;  %p1140_p1 = por %p1139_p0, %p1138_p13 }
  0x30   : > { %p1134_p12 = pneg %p1133_p11 }
  0x32   : > { %p1141_p4 = pnand %p1140_p1, %p1134_p12 }
  0x34   : > { %1144 = shalt.err (!%p1141_p4)
}
  0x35   : > { %1054 = dma.hbm_to_vmem [thread:$0]  (!%p1252_p5), %s1411_s1, 896, %s1256_s27, [#allocation3], %s1192_s16, %s1192_s16, %s1193_s17  }
  0x36   : > { %s1145_s15 = scalar_lea.hbm %s1414_s4, 2048 }
  0x37   : > { %p1146_p2 = scmp.ne.s32.totalorder %s1414_s4, %s1145_s15  ;;  %p1152_p8 = scmp.lt.u32.totalorder %s1145_s15, %s1414_s4 }
  0x39   : > { %p1148_p3 = pnand %p1146_p2, %p1268_p7 }
  0x3b   : > { %p1149_p6 = pneg %p1148_p3 }
  0x3d   : > { %p1154_p9 = pnand %p1152_p8, %p1149_p6 }
  0x3f   : > { %1157 = shalt.err (!%p1154_p9)
}
  0x40   : > { %s1158_s27 = scalar_lea.vmem %s1258_s30, 2048  ;;  %p1166_p13 = scmp.lt.s32.totalorder %s1258_s30, %s1258_s30 }
  0x41   : > { %p1159_p10 = scmp.ne.s32.totalorder %s1258_s30, %s1158_s27  ;;  %p1167_p0 = scmp.lt.s32.totalorder %s1158_s27, %s1158_s27 }
  0x43   : > { %p1161_p11 = pnand %p1159_p10, %p1268_p7  ;;  %p1168_p1 = por %p1167_p0, %p1166_p13 }
  0x45   : > { %p1162_p12 = pneg %p1161_p11 }
  0x47   : > { %p1169_p4 = pnand %p1168_p1, %p1162_p12 }
  0x49   : > { %1172 = shalt.err (!%p1169_p4)
}
  0x4a   : > { %1060 = dma.hbm_to_vmem [thread:$0]  (!%p1252_p5), %s1414_s4, 2048, %s1258_s30, [#allocation5], %s1192_s16, %s1192_s16, %s1193_s17  }
  0x4b   : > { %p1422_p2 = scmp.ne.s32.totalorder %s1419_s23, 0 }
  0x4c   : > { %p1423_p7 = scmp.eq.s32.totalorder (!%p1422_p2), %s1239_s22, 0 }
  0x4d   : > { %247 = sbr.rel (%p1422_p2) target bundleno = 1611 (0x64b), region = 44 }
  0x54   : > { %1178 = dma.done.wait (%p1423_p7), [#allocation3], 896   ;;  %p1424_p3 = pmov %p1423_p7 }
  0x56   : > { %1180 = vsyncadd (%p1424_p3), [#allocation3], 4294966400  ;;  %p1425_p6 = pmov %p1424_p3 }
  0x57   : > { %p1426_p8 = pmov %p1424_p3 }
  0x58   : > { %1182 = dma.done.wait (%p1425_p6), [#allocation5], 4096  }
  0x59   : > { %1184 = vsyncadd (%p1426_p8), [#allocation5], 4294963200  ;;  %p284_p9 = scmp.lt.s32.totalorder %s1239_s22, 1  ;;  %v1194_v0 = vmov 0   ;;  %v1195_v1 = vmov 0.0|0.0   ;;  %v301_v3 = vld [vmem:[#allocation2] sm:$0xff]  ;;  %v294_v38 = vlaneseq }
  0x5a   : > { %1084 = vset.pattern.permute.xlu0 %v1194_v0  ;;  %982 = vmatprep.subr.bf16.mxu0 %v1195_v1  ;;  %v302_v4 = vld [vmem:[#allocation2 + $0x8] sm:$0xff]  ;;  %v303_v6 = vld [vmem:[#allocation2 + $0x10] sm:$0xff]  ;;  %v304_v7 = vld [vmem:[#allocation2 + $0x18] sm:$0xff]  ;;  %vm1196_vm0 = vmmov 0   ;;  %v1197_v8 = vmov 0.0   ;;  %vm312_vm1 = vcmask 1041408  }
  0x5b   : > { %s1428_s22 = smov (!%p284_p9, %s1239_s22), 1  ;;  %991 = vmatprep.subr.bf16.mxu1 %v1195_v1  ;;  %v983_v5 = vpack.c.bf16 %v302_v4, %v301_v3  ;;  %899 = vmatprep.mubr.msk.f32.mxu0 %vm1196_vm0, %v1197_v8  ;;  %v986_v9 = vpack.c.bf16 %v304_v7, %v303_v6  ;;  %v386_v10 = vld [vmem:[#allocation4] sm:$0xff]  ;;  %v387_v11 = vld [vmem:[#allocation4 + $0x8] sm:$0xff]  ;;  %v388_v12 = vld [vmem:[#allocation4 + $0x10] sm:$0xff]  ;;  %v295_v39 = vand.u32 127, %v294_v38  ;;  %vm308_vm2 = vcmask 408576  }
  0x5c   : > { %s828_s23 = sshll.u32 %s1428_s22, 3  ;;  %934 = vmatprep.mubr.msk.f32.mxu1 %vm1196_vm0, %v1197_v8  ;;  %v305_v13 = vld [vmem:[#allocation2 + $0x20] sm:$0xff]  ;;  %v306_v14 = vld [vmem:[#allocation2 + $0x28] sm:$0xff]  ;;  %v992_v15 = vpack.c.bf16 %v387_v11, %v386_v10  ;;  %v389_v16 = vld [vmem:[#allocation4 + $0x18] sm:$0xff]  ;;  %s838_s16 = sshll.u32 %s1428_s22, 4  ;;  %vm644_vm4 = vcmask 64512  }
  0x5d   : > { %s287_s12 = scalar_lea.vmem %s1410_s0, %s828_s23  ;;  %984 = vmatpush3.bf16.msra.mxu0 %v983_v5  ;;  %v995_v17 = vpack.c.bf16 %v389_v16, %v388_v12  ;;  %v989_v18 = vpack.c.bf16 %v306_v14, %v305_v13  ;;  %v390_v19 = vld [vmem:[#allocation4 + $0x20] sm:$0xff]  ;;  %v391_v20 = vld [vmem:[#allocation4 + $0x28] sm:$0xff]  ;;  %v392_v22 = vld [vmem:[#allocation4 + $0x30] sm:$0xff]  ;;  %s1389_s8 = scalar_lea.vmem %s1416_s6, %s838_s16 }
  0x5e   : > { %v293_v2 = vld [vmem:[%s287_s12] sm:$0xff]  ;;  %985 = vmatprep.subr.bf16.mxu0 %v1195_v1  ;;  %993 = vmatpush3.bf16.msra.mxu1 %v992_v15  ;;  %v998_v21 = vpack.c.bf16 %v391_v20, %v390_v19  ;;  %v393_v23 = vld [vmem:[#allocation4 + $0x38] sm:$0xff]  ;;  %v394_v26 = vld [vmem:[#allocation4 + $0x40] sm:$0xff] }
  0x5f   : > { %297 = vperm.xlu0 %1084, %v293_v2   ;;  %994 = vmatprep.subr.bf16.mxu1 %v1195_v1  ;;  %v307_v24 = vld [vmem:[#allocation2 + $0x30] sm:$0x3]  ;;  %v1001_v25 = vpack.c.bf16 %v393_v23, %v392_v22  ;;  %v395_v27 = vld [vmem:[#allocation4 + $0x48] sm:$0xff]  ;;  %v396_v29 = vld [vmem:[#allocation4 + $0x50] sm:$0xff] }
  0x60   : > { %v1004_v28 = vpack.c.bf16 %v395_v27, %v394_v26  ;;  %v397_v30 = vld [vmem:[#allocation4 + $0x58] sm:$0xff]  ;;  %v398_v32 = vld [vmem:[#allocation4 + $0x60] sm:$0xff]  ;;  %v399_v33 = vld [vmem:[#allocation4 + $0x68] sm:$0xff] }
  0x61   : > { %987 = vmatpush3.bf16.msra.mxu0 %v986_v9  ;;  %v1007_v31 = vpack.c.bf16 %v397_v30, %v396_v29  ;;  %v1010_v34 = vpack.c.bf16 %v399_v33, %v398_v32  ;;  %v400_v35 = vld [vmem:[#allocation4 + $0x70] sm:$0xff]  ;;  %v401_v36 = vld [vmem:[#allocation4 + $0x78] sm:$0xff]  ;;  %v480_v42 = vld [vmem:[#allocation6] sm:$0xff] }
  0x62   : > { %988 = vmatprep.subr.bf16.mxu0 %v1195_v1  ;;  %996 = vmatpush3.bf16.msra.mxu1 %v995_v17  ;;  %v1013_v37 = vpack.c.bf16 %v401_v36, %v400_v35  ;;  %v481_v43 = vld [vmem:[#allocation6 + $0x8] sm:$0xff]  ;;  %v482_v44 = vld [vmem:[#allocation6 + $0x10] sm:$0xff]  ;;  %v483_v46 = vld [vmem:[#allocation6 + $0x18] sm:$0xff] }
  0x63   : > { %997 = vmatprep.subr.bf16.mxu1 %v1195_v1  ;;  %v1016_v45 = vpack.c.bf16 %v481_v43, %v480_v42  ;;  %v1019_v47 = vpack.c.bf16 %v483_v46, %v482_v44  ;;  %v484_v48 = vld [vmem:[#allocation6 + $0x20] sm:$0xff]  ;;  %v485_v49 = vld [vmem:[#allocation6 + $0x28] sm:$0xff]  ;;  %v486_v51 = vld [vmem:[#allocation6 + $0x30] sm:$0xff] }
  0x64   : > { %v1022_v50 = vpack.c.bf16 %v485_v49, %v484_v48  ;;  %v487_v52 = vld [vmem:[#allocation6 + $0x38] sm:$0xff]  ;;  %v488_v54 = vld [vmem:[#allocation6 + $0x40] sm:$0xff]  ;;  %v489_v55 = vld [vmem:[#allocation6 + $0x48] sm:$0xff] }
  0x65   : > { %990 = vmatpush3.bf16.msra.mxu0 %v989_v18  ;;  %v1025_v53 = vpack.c.bf16 %v487_v52, %v486_v51  ;;  %v1028_v56 = vpack.c.bf16 %v489_v55, %v488_v54  ;;  %v490_v57 = vld [vmem:[#allocation6 + $0x50] sm:$0xff]  ;;  %v491_v58 = vld [vmem:[#allocation6 + $0x58] sm:$0xff]  ;;  %v492_v60 = vld [vmem:[#allocation6 + $0x60] sm:$0xff] }
  0x66   : > { %897 = vmatprep.subr.mxu0 %v1197_v8  ;;  %999 = vmatpush3.bf16.msra.mxu1 %v998_v21  ;;  %v1031_v59 = vpack.c.bf16 %v491_v58, %v490_v57  ;;  %v493_v61 = vld [vmem:[#allocation6 + $0x68] sm:$0xff]  ;;  %v494_v2 = vld [vmem:[#allocation6 + $0x70] sm:$0xff]  ;;  %v495_v3 = vld [vmem:[#allocation6 + $0x78] sm:$0xff] }
  0x67   : > { %1000 = vmatprep.subr.bf16.mxu1 %v1195_v1  ;;  %v1034_v62 = vpack.c.bf16 %v493_v61, %v492_v60  ;;  %v1037_v4 = vpack.c.bf16 %v495_v3, %v494_v2  ;;  %v834_v10 = vld [vmem:[%s1415_s5] ss:$0 sm:$0xff] }
  0x69   : > { %898 = vmatpush3.msk.msra.mxu0 %vm312_vm1, %v307_v24 }
  0x6a   : > { %1015 = vmatprep.subr.bf16.mxu0 %v1195_v1  ;;  %1002 = vmatpush3.bf16.msra.mxu1 %v1001_v25 }
  0x6b   : > { %1003 = vmatprep.subr.bf16.mxu1 %v1195_v1 }
  0x6e   : > { %1005 = vmatpush3.bf16.msra.mxu1 %v1004_v28 }
  0x6f   : > { %1006 = vmatprep.subr.bf16.mxu1 %v1195_v1 }
  0x72   : > { %1008 = vmatpush3.bf16.msra.mxu1 %v1007_v31 }
  0x73   : > { %1009 = vmatprep.subr.bf16.mxu1 %v1195_v1 }
  0x76   : > { %1011 = vmatpush3.bf16.msra.mxu1 %v1010_v34 }
  0x77   : > { %1012 = vmatprep.subr.bf16.mxu1 %v1195_v1 }
  0x7a   : > { %1014 = vmatpush3.bf16.msra.mxu1 %v1013_v37 }
  0x7b   : > { %972 = vmatprep.subr.mxu1 %v1197_v8 }
  0xde   : > { %v298_v40 = vpop.permute.xlu0 %297 }
  0xdf   : > { %vm299_vm3 = vcmp.eq.s32.totalorder %v298_v40, %v295_v39 }
  0xe0   : > { %v300_v41 = vsel %vm299_vm3, 1.0, %v1197_v8 }
  0xe1   : > { %900 = vmatmul.mubr.msk.f32.vlgmr.msra.gmra.mrb[0].mxu0 %vm308_vm2, %v300_v41 }
  0xe2   : > { %969 = vmatprep.mubr.msk.f32.mxu0 %vm1196_vm0, %v1197_v8  ;;  %1017 = vmatpush3.bf16.msra.mxu0 %v1016_v45 }
  0xe3   : > { %1018 = vmatprep.subr.bf16.mxu0 %v1195_v1 }
  0xe6   : > { %1020 = vmatpush3.bf16.msra.mxu0 %v1019_v47 }
  0xe7   : > { %1021 = vmatprep.subr.bf16.mxu0 %v1195_v1 }
  0xea   : > { %1023 = vmatpush3.bf16.msra.mxu0 %v1022_v50 }
  0xeb   : > { %1024 = vmatprep.subr.bf16.mxu0 %v1195_v1 }
  0xee   : > { %1026 = vmatpush3.bf16.msra.mxu0 %v1025_v53 }
  0xef   : > { %1027 = vmatprep.subr.bf16.mxu0 %v1195_v1 }
  0xf2   : > { %1029 = vmatpush3.bf16.msra.mxu0 %v1028_v56 }
  0xf3   : > { %1030 = vmatprep.subr.bf16.mxu0 %v1195_v1 }
  0xf6   : > { %1032 = vmatpush3.bf16.msra.mxu0 %v1031_v59 }
  0xf7   : > { %1033 = vmatprep.subr.bf16.mxu0 %v1195_v1 }
  0xfa   : > { %1035 = vmatpush3.bf16.msra.mxu0 %v1034_v62 }
  0xfb   : > { %1036 = vmatprep.subr.bf16.mxu0 %v1195_v1  ;;  %v833_v1 = vld [vmem:[%s1413_s3] ss:$0 sm:$0xff] }
  0xfe   : > { %1038 = vmatpush3.bf16.msra.mxu0 %v1037_v4 }
 0x1b4   : > { %v382_v63 = vpop.f32.mrb[0].mxu0 }
 0x1b5   : > { %729 = vst [vmem:[%s1389_s8] sm:$0xff] %v382_v63  ;;  %v901_v0 = vpop.f32.mrb[1].mxu0  ;;  %935 = vmatmul.mubr.f32.vlgmr.msra.gmra.mrb[0].mxu1 %v382_v63 }
 0x1b6   : > { %974 = vmatprep.mubr.msk.f32.mxu1 %vm1196_vm0, %v1197_v8 }
 0x288   : > { %v475_v5 = vpop.f32.mrb[0].mxu1 }
 0x289   : > { %v476_v6 = vadd.f32 %v833_v1, %v475_v5  ;;  %v936_v7 = vpop.f32.mrb[1].mxu1 }
 0x28b   : > { %v479_v9 = vmax.f32 %v476_v6, 0.0 }
 0x28d   : > { %970 = vmatmul.mubr.f32.vlgmr.msra.gmra.mrb[2].mxu0 %v479_v9 }
 0x360   : > { %v569_v11 = vpop.f32.mrb[2].mxu0 }
 0x361   : > { %v570_v12 = vadd.f32 %v834_v10, %v569_v11  ;;  %v971_v13 = vpop.f32.mrb[3].mxu0 }
 0x363   : > { %v573_v14 = vmax.f32 %v570_v12, 0.0 }
 0x365   : > { %973 = vmatpush3.xpose.msra.mxu1 %v573_v14 }
 0x366   : > { %977 = vmatprep.subr.mxu1 %v1197_v8 }
 0x368   : > { %975 = vmatmul.mubr.f32.vlgmr.msra.gmra.mrb[2].mxu1 %v573_v14 }
 0x369   : > { %978 = vmatpush3.msra.mxu1 %v382_v63  ;;  %979 = vmatprep.mubr.msk.f32.mxu1 %vm1196_vm0, %v1197_v8 }
 0x43b   : > { %v640_v15 = vpop.f32.mrb[2].mxu1 }
 0x43c   : > { %v976_v16 = vpop.f32.mrb[3].mxu1  ;;  %v645_v17 = vsel %vm644_vm4, %v640_v15, -inf }
 0x43d   : > { %646 = vmax.xlane.f32.xlu0 %v645_v17 }
 0x4ca   : > { %v647_v18 = vpop.xlane.xlu0 %646 }
 0x4cb   : > { %v648_v19 = vsub.f32 %v640_v15, %v647_v18 }
 0x4cd   : > { %v649_v20 = vmul.f32 1.442695, %v648_v19 }
 0x4cf   : > { %1085 = vpow2.f32 %v649_v20 }
 0x4d9   : > { %v1086_v21 = vpop.eup %1085 }
 0x4da   : > { %v651_v22 = vsel %vm644_vm4, %v1086_v21, 0.0 }
 0x4db   : > { %652 = vadd.xlane.f32.xlu1 %v651_v22 }
 0x568   : > { %v653_v23 = vpop.xlane.xlu1 %652 }
 0x569   : > { %1087 = vrcp.f32 %v653_v23 }
 0x573   : > { %v1088_v24 = vpop.eup %1087 }
 0x574   : > { %v655_v25 = vmul.f32 %v1088_v24, %v1086_v21 }
 0x576   : > { %980 = vmatmul.mubr.msk.f32.vlgmr.msra.gmra.mrb[4].mxu1 %vm644_vm4, %v655_v25 }
 0x649   : > { %v725_v8 = vpop.f32.mrb[4].mxu1 }
 0x64a   : > { %730 = vst [vmem:[%s1389_s8 + $0x8] sm:$0xff] %v725_v8  ;;  %v981_v26 = vpop.f32.mrb[5].mxu1 }
 0x64b PF: > { %s18_s21 = sadd.s32 1, %s1187_s21  }
 0x64c   : > { %p15_p5 = scmp.ge.s32.totalorder %s18_s21, 4  }
 0x64e   :  { %17 = sbr.rel (!%p15_p5) target bundleno = 2 (0x2), region = 87 }
 0x655   :  { %752 = vsyncpa [#allocation3], 1 }
 0x656   :  { %754 = vsyncpa [#allocation3 + $0x1], 1 }
 0x657   :  { %755 = vsyncpa [#allocation5], 1 }

</bundles_post_ra>
